<compile_context>
chip_gen: v7x
topology: tpu7x:2x2x1
jax: 0.10.0
libtpu: 0.0.40
codegen_flags: <defaults>
</compile_context>

<pallas_src>
import functools

import jax
import jax.numpy as jnp
from jax import lax
from jax.experimental import pallas as pl
from jax.experimental.pallas import tpu as pltpu


def _lstm_fc_kernel(x_ref, wih_ref, whh_ref, b_ref, fcw_ref, fcb_ref, out_ref,
                    *, hidden_size, seq_len):
    H = hidden_size
    TB = x_ref.shape[0]

    x = x_ref[...]          # (TB, T)   ndvi values (input_size == 1)
    wih = wih_ref[...]      # (1, 4H)   gate order (i, f, o, g)
    whh = whh_ref[...]      # (H, 4H)
    bias = b_ref[...]       # (1, 4H)   (= b_ih + b_hh)

    # Input projection + bias for every timestep, hoisted off the recurrence.
    # Depends only on x, so the scheduler can overlap it with the serial chain.
    pre = [x[:, t:t + 1] * wih + bias for t in range(seq_len)]   # T x (TB, 4H)

    h = jnp.zeros((TB, H), jnp.float32)
    c = jnp.zeros((TB, H), jnp.float32)

    # Fully unrolled recurrence: no dynamic lane slices, no per-iteration scalar
    # loop overhead, full LLO-scheduler visibility across the T steps.
    for t in range(seq_len):
        gates = pre[t] + jnp.dot(h, whh, preferred_element_type=jnp.float32)
        sig = jax.nn.sigmoid(gates[:, :3 * H])    # (i, f, o) contiguous -> one EUP pass
        g_g = jnp.tanh(gates[:, 3 * H:])
        i_g = sig[:, 0 * H:1 * H]
        f_g = sig[:, 1 * H:2 * H]
        o_g = sig[:, 2 * H:3 * H]
        c = f_g * c + i_g * g_g
        h = o_g * jnp.tanh(c)

    # Fused fc(h_last): (TB, H) @ (H, 1) + bias
    out_ref[...] = (jnp.dot(h, fcw_ref[...], preferred_element_type=jnp.float32)
                    + fcb_ref[...])


def lstm_ndvi_forward(ndvi, years, seasons, params, *, sequence_length, hidden_size):
    """Equivalent of LSTMNDVIModel.forward (years / seasons are unused there)."""
    del years, seasons  # not used in the reference forward pass
    H = hidden_size
    T = sequence_length

    # ndvi.view(-1, T, 1) -> keep (B, T) since input_size == 1
    x = ndvi.reshape(-1, T).astype(jnp.float32)
    B = x.shape[0]

    # Batch tile: pad small batches up to the sublane multiple; cap at 512 rows so
    # large batches still pipeline / shard across cores while each grid step does
    # enough work to hide the per-step overhead.
    MAX_TB = 512
    if B <= MAX_TB:
        TB = max(8, ((B + 7) // 8) * 8)
    else:
        TB = MAX_TB
    num_tiles = pl.cdiv(B, TB)
    B_pad = num_tiles * TB
    if B_pad != B:
        x = jnp.pad(x, ((0, B_pad - B), (0, 0)))

    w_ih, w_hh, b_ih, b_hh, fc_w, fc_b = (
        params["w_ih"], params["w_hh"], params["b_ih"], params["b_hh"],
        params["fc_w"], params["fc_b"])

    # Reorder gate rows from torch order (i, f, g, o) -> (i, f, o, g) so the
    # sigmoid gates form one contiguous 3H slice inside the kernel.
    perm = jnp.concatenate([jnp.arange(0, 2 * H),          # i, f
                            jnp.arange(3 * H, 4 * H),      # o
                            jnp.arange(2 * H, 3 * H)])     # g
    wih_t = w_ih[perm].reshape(4 * H, 1).T          # (1, 4H)
    whh_t = w_hh[perm].T                            # (H, 4H)
    b = (b_ih + b_hh)[perm].reshape(1, 4 * H)       # (1, 4H)
    fcw_t = fc_w.reshape(1, H).T                    # (H, 1)
    fcb = fc_b.reshape(1, 1)                        # (1, 1)

    kernel = functools.partial(_lstm_fc_kernel, hidden_size=H, seq_len=T)

    out = pl.pallas_call(
        kernel,
        out_shape=jax.ShapeDtypeStruct((B_pad, 1), jnp.float32),
        grid=(num_tiles,),
        in_specs=[
            pl.BlockSpec((TB, T), lambda i: (i, 0)),         # per-tile input rows
            pl.BlockSpec((1, 4 * H), lambda i: (0, 0)),      # weights stay VMEM-resident
            pl.BlockSpec((H, 4 * H), lambda i: (0, 0)),
            pl.BlockSpec((1, 4 * H), lambda i: (0, 0)),
            pl.BlockSpec((H, 1), lambda i: (0, 0)),
            pl.BlockSpec((1, 1), lambda i: (0, 0)),
        ],
        out_specs=pl.BlockSpec((TB, 1), lambda i: (i, 0)),
        compiler_params=pltpu.CompilerParams(
            dimension_semantics=("parallel",)),              # shard batch tiles across TCs
    )(x, wih_t, whh_t, b, fcw_t, fcb)

    # drop batch padding, then out.squeeze()
    return jnp.squeeze(out[:B, 0])


def _reference_forward(ndvi, params, *, sequence_length, hidden_size):
    """Pure-JAX reference mirroring torch.nn.LSTM + nn.Linear semantics."""
    H = hidden_size
    x = ndvi.reshape(-1, sequence_length, 1).astype(jnp.float32)
    B = x.shape[0]
    w_ih, w_hh, b_ih, b_hh, fc_w, fc_b = (
        params["w_ih"], params["w_hh"], params["b_ih"], params["b_hh"],
        params["fc_w"], params["fc_b"])

    def step(carry, x_t):
        h, c = carry
        gates = x_t @ w_ih.T + b_ih + h @ w_hh.T + b_hh
        i_g = jax.nn.sigmoid(gates[:, 0 * H:1 * H])
        f_g = jax.nn.sigmoid(gates[:, 1 * H:2 * H])
        g_g = jnp.tanh(gates[:, 2 * H:3 * H])
        o_g = jax.nn.sigmoid(gates[:, 3 * H:4 * H])
        c_new = f_g * c + i_g * g_g
        h_new = o_g * jnp.tanh(c_new)
        return (h_new, c_new), None

    h0 = jnp.zeros((B, H), jnp.float32)
    c0 = jnp.zeros((B, H), jnp.float32)
    (h_last, _), _ = lax.scan(step, (h0, c0), jnp.swapaxes(x, 0, 1))
    out = h_last @ fc_w.T + fc_b
    return jnp.squeeze(out)


def _init_params(key, hidden_size):
    """Deterministic init matching the torch parameter shapes (input_size=1)."""
    H = hidden_size
    k = 1.0 / jnp.sqrt(jnp.float32(H))
    keys = jax.random.split(key, 6)
    u = lambda kk, shape: jax.random.uniform(kk, shape, jnp.float32, -k, k)
    return {
        "w_ih": u(keys[0], (4 * H, 1)),   # lstm.weight_ih_l0
        "w_hh": u(keys[1], (4 * H, H)),   # lstm.weight_hh_l0
        "b_ih": u(keys[2], (4 * H,)),     # lstm.bias_ih_l0
        "b_hh": u(keys[3], (4 * H,)),     # lstm.bias_hh_l0
        "fc_w": u(keys[4], (1, H)),       # fc.weight
        "fc_b": u(keys[5], (1,)),         # fc.bias
    }


if __name__ == "__main__":
    sequence_length = 8
    hidden_size = 32
    batch = 8

    key = jax.random.PRNGKey(0)
    k_param, k_ndvi, k_years, k_seasons = jax.random.split(key, 4)

    params = _init_params(k_param, hidden_size)
    ndvi = jax.random.normal(k_ndvi, (batch, sequence_length), jnp.float32)
    years = jax.random.randint(k_years, (batch,), 2000, 2024)       # unused by forward
    seasons = jax.random.randint(k_seasons, (batch,), 0, 4)         # unused by forward

    out = lstm_ndvi_forward(ndvi, years, seasons, params,
                            sequence_length=sequence_length,
                            hidden_size=hidden_size)
    out = jax.block_until_ready(out)

    ref = _reference_forward(ndvi, params,
                             sequence_length=sequence_length,
                             hidden_size=hidden_size)
    assert out.shape == (batch,)
    assert jnp.allclose(out, ref, atol=1e-5, rtol=1e-5), (out, ref)

    print("KERNEL_OK")
</pallas_src>

<mosaic_0001>
module attributes {stable_mosaic.version = 11 : i64} {
  func.func @_lstm_fc_kernel(%arg0: i32, %arg1: memref<8x8xf32, #tpu.memory_space<vmem>>, %arg2: memref<1x128xf32, #tpu.memory_space<vmem>>, %arg3: memref<32x128xf32, #tpu.memory_space<vmem>>, %arg4: memref<1x128xf32, #tpu.memory_space<vmem>>, %arg5: memref<32x1xf32, #tpu.memory_space<vmem>>, %arg6: memref<1x1xf32, #tpu.memory_space<vmem>>, %arg7: memref<8x1xf32, #tpu.memory_space<vmem>>) attributes {dimension_semantics = [#tpu.dimension_semantics<parallel>], iteration_bounds = array<i64: 1>, scalar_prefetch = 0 : i64, scratch_operands = 0 : i64, tpu.core_type = #tpu.core_type<tc>, window_params = [{transform_indices = @transform_0, window_bounds = array<i64: 8, 8>}, {pipeline_mode = #tpu.pipeline_mode<synchronous>, transform_indices = @transform_1, window_bounds = array<i64: 1, 128>}, {pipeline_mode = #tpu.pipeline_mode<synchronous>, transform_indices = @transform_2, window_bounds = array<i64: 32, 128>}, {pipeline_mode = #tpu.pipeline_mode<synchronous>, transform_indices = @transform_3, window_bounds = array<i64: 1, 128>}, {pipeline_mode = #tpu.pipeline_mode<synchronous>, transform_indices = @transform_4, window_bounds = array<i64: 32, 1>}, {pipeline_mode = #tpu.pipeline_mode<synchronous>, transform_indices = @transform_5, window_bounds = array<i64: 1, 1>}, {transform_indices = @transform_6, window_bounds = array<i64: 8, 1>}]} {
    %c0 = arith.constant 0 : index
    %c0_0 = arith.constant 0 : index
    %0 = vector.load %arg1[%c0, %c0_0] : memref<8x8xf32, #tpu.memory_space<vmem>>, vector<8x8xf32>
    %c0_1 = arith.constant 0 : index
    %c0_2 = arith.constant 0 : index
    %1 = vector.load %arg2[%c0_1, %c0_2] : memref<1x128xf32, #tpu.memory_space<vmem>>, vector<1x128xf32>
    %c0_3 = arith.constant 0 : index
    %c0_4 = arith.constant 0 : index
    %2 = vector.load %arg3[%c0_3, %c0_4] : memref<32x128xf32, #tpu.memory_space<vmem>>, vector<32x128xf32>
    %c0_5 = arith.constant 0 : index
    %c0_6 = arith.constant 0 : index
    %3 = vector.load %arg4[%c0_5, %c0_6] : memref<1x128xf32, #tpu.memory_space<vmem>>, vector<1x128xf32>
    %4 = vector.extract_strided_slice %0 {offsets = [0, 0], sizes = [8, 1], strides = [1, 1]} : vector<8x8xf32> to vector<8x1xf32>
    %5 = vector.broadcast %4 : vector<8x1xf32> to vector<8x128xf32>
    %6 = vector.broadcast %1 : vector<1x128xf32> to vector<8x128xf32>
    %7 = arith.mulf %5, %6 : vector<8x128xf32>
    %8 = vector.broadcast %3 : vector<1x128xf32> to vector<8x128xf32>
    %9 = arith.addf %7, %8 : vector<8x128xf32>
    %10 = vector.extract_strided_slice %0 {offsets = [0, 1], sizes = [8, 1], strides = [1, 1]} : vector<8x8xf32> to vector<8x1xf32>
    %11 = vector.broadcast %10 : vector<8x1xf32> to vector<8x128xf32>
    %12 = vector.broadcast %1 : vector<1x128xf32> to vector<8x128xf32>
    %13 = arith.mulf %11, %12 : vector<8x128xf32>
    %14 = vector.broadcast %3 : vector<1x128xf32> to vector<8x128xf32>
    %15 = arith.addf %13, %14 : vector<8x128xf32>
    %16 = vector.extract_strided_slice %0 {offsets = [0, 2], sizes = [8, 1], strides = [1, 1]} : vector<8x8xf32> to vector<8x1xf32>
    %17 = vector.broadcast %16 : vector<8x1xf32> to vector<8x128xf32>
    %18 = vector.broadcast %1 : vector<1x128xf32> to vector<8x128xf32>
    %19 = arith.mulf %17, %18 : vector<8x128xf32>
    %20 = vector.broadcast %3 : vector<1x128xf32> to vector<8x128xf32>
    %21 = arith.addf %19, %20 : vector<8x128xf32>
    %22 = vector.extract_strided_slice %0 {offsets = [0, 3], sizes = [8, 1], strides = [1, 1]} : vector<8x8xf32> to vector<8x1xf32>
    %23 = vector.broadcast %22 : vector<8x1xf32> to vector<8x128xf32>
    %24 = vector.broadcast %1 : vector<1x128xf32> to vector<8x128xf32>
    %25 = arith.mulf %23, %24 : vector<8x128xf32>
    %26 = vector.broadcast %3 : vector<1x128xf32> to vector<8x128xf32>
    %27 = arith.addf %25, %26 : vector<8x128xf32>
    %28 = vector.extract_strided_slice %0 {offsets = [0, 4], sizes = [8, 1], strides = [1, 1]} : vector<8x8xf32> to vector<8x1xf32>
    %29 = vector.broadcast %28 : vector<8x1xf32> to vector<8x128xf32>
    %30 = vector.broadcast %1 : vector<1x128xf32> to vector<8x128xf32>
    %31 = arith.mulf %29, %30 : vector<8x128xf32>
    %32 = vector.broadcast %3 : vector<1x128xf32> to vector<8x128xf32>
    %33 = arith.addf %31, %32 : vector<8x128xf32>
    %34 = vector.extract_strided_slice %0 {offsets = [0, 5], sizes = [8, 1], strides = [1, 1]} : vector<8x8xf32> to vector<8x1xf32>
    %35 = vector.broadcast %34 : vector<8x1xf32> to vector<8x128xf32>
    %36 = vector.broadcast %1 : vector<1x128xf32> to vector<8x128xf32>
    %37 = arith.mulf %35, %36 : vector<8x128xf32>
    %38 = vector.broadcast %3 : vector<1x128xf32> to vector<8x128xf32>
    %39 = arith.addf %37, %38 : vector<8x128xf32>
    %40 = vector.extract_strided_slice %0 {offsets = [0, 6], sizes = [8, 1], strides = [1, 1]} : vector<8x8xf32> to vector<8x1xf32>
    %41 = vector.broadcast %40 : vector<8x1xf32> to vector<8x128xf32>
    %42 = vector.broadcast %1 : vector<1x128xf32> to vector<8x128xf32>
    %43 = arith.mulf %41, %42 : vector<8x128xf32>
    %44 = vector.broadcast %3 : vector<1x128xf32> to vector<8x128xf32>
    %45 = arith.addf %43, %44 : vector<8x128xf32>
    %46 = vector.extract_strided_slice %0 {offsets = [0, 7], sizes = [8, 1], strides = [1, 1]} : vector<8x8xf32> to vector<8x1xf32>
    %47 = vector.broadcast %46 : vector<8x1xf32> to vector<8x128xf32>
    %48 = vector.broadcast %1 : vector<1x128xf32> to vector<8x128xf32>
    %49 = arith.mulf %47, %48 : vector<8x128xf32>
    %50 = vector.broadcast %3 : vector<1x128xf32> to vector<8x128xf32>
    %51 = arith.addf %49, %50 : vector<8x128xf32>
    %cst = arith.constant 0.000000e+00 : f32
    %52 = vector.broadcast %cst : f32 to vector<8x32xf32>
    %cst_7 = arith.constant 0.000000e+00 : f32
    %53 = vector.broadcast %cst_7 : f32 to vector<8x32xf32>
    %cst_8 = arith.constant dense<0.000000e+00> : vector<8x128xf32>
    %54 = tpu.matmul %52, %2, %cst_8 {dimension_numbers = #tpu.dot_dimension_numbers<[1], [0], [0], [1], [0, 0, 1, 1], [], []>} : vector<8x32xf32>, vector<32x128xf32>, vector<8x128xf32> -> vector<8x128xf32>
    %55 = arith.addf %9, %54 : vector<8x128xf32>
    %56 = vector.extract_strided_slice %55 {offsets = [0, 0], sizes = [8, 96], strides = [1, 1]} : vector<8x128xf32> to vector<8x96xf32>
    %57 = arith.negf %56 : vector<8x96xf32>
    %58 = math.exp %57 : vector<8x96xf32>
    %cst_9 = arith.constant 1.000000e+00 : f32
    %59 = vector.broadcast %cst_9 : f32 to vector<8x96xf32>
    %60 = arith.addf %59, %58 : vector<8x96xf32>
    %61 = arith.divf %59, %60 : vector<8x96xf32>
    %62 = vector.extract_strided_slice %55 {offsets = [0, 96], sizes = [8, 32], strides = [1, 1]} : vector<8x128xf32> to vector<8x32xf32>
    %63 = math.tanh %62 : vector<8x32xf32>
    %64 = vector.extract_strided_slice %61 {offsets = [0, 0], sizes = [8, 32], strides = [1, 1]} : vector<8x96xf32> to vector<8x32xf32>
    %65 = vector.extract_strided_slice %61 {offsets = [0, 32], sizes = [8, 32], strides = [1, 1]} : vector<8x96xf32> to vector<8x32xf32>
    %66 = vector.extract_strided_slice %61 {offsets = [0, 64], sizes = [8, 32], strides = [1, 1]} : vector<8x96xf32> to vector<8x32xf32>
    %67 = arith.mulf %65, %53 : vector<8x32xf32>
    %68 = arith.mulf %64, %63 : vector<8x32xf32>
    %69 = arith.addf %67, %68 : vector<8x32xf32>
    %70 = math.tanh %69 : vector<8x32xf32>
    %71 = arith.mulf %66, %70 : vector<8x32xf32>
    %cst_10 = arith.constant dense<0.000000e+00> : vector<8x128xf32>
    %72 = tpu.matmul %71, %2, %cst_10 {dimension_numbers = #tpu.dot_dimension_numbers<[1], [0], [0], [1], [0, 0, 1, 1], [], []>} : vector<8x32xf32>, vector<32x128xf32>, vector<8x128xf32> -> vector<8x128xf32>
    %73 = arith.addf %15, %72 : vector<8x128xf32>
    %74 = vector.extract_strided_slice %73 {offsets = [0, 0], sizes = [8, 96], strides = [1, 1]} : vector<8x128xf32> to vector<8x96xf32>
    %75 = arith.negf %74 : vector<8x96xf32>
    %76 = math.exp %75 : vector<8x96xf32>
    %cst_11 = arith.constant 1.000000e+00 : f32
    %77 = vector.broadcast %cst_11 : f32 to vector<8x96xf32>
    %78 = arith.addf %77, %76 : vector<8x96xf32>
    %79 = arith.divf %77, %78 : vector<8x96xf32>
    %80 = vector.extract_strided_slice %73 {offsets = [0, 96], sizes = [8, 32], strides = [1, 1]} : vector<8x128xf32> to vector<8x32xf32>
    %81 = math.tanh %80 : vector<8x32xf32>
    %82 = vector.extract_strided_slice %79 {offsets = [0, 0], sizes = [8, 32], strides = [1, 1]} : vector<8x96xf32> to vector<8x32xf32>
    %83 = vector.extract_strided_slice %79 {offsets = [0, 32], sizes = [8, 32], strides = [1, 1]} : vector<8x96xf32> to vector<8x32xf32>
    %84 = vector.extract_strided_slice %79 {offsets = [0, 64], sizes = [8, 32], strides = [1, 1]} : vector<8x96xf32> to vector<8x32xf32>
    %85 = arith.mulf %83, %69 : vector<8x32xf32>
    %86 = arith.mulf %82, %81 : vector<8x32xf32>
    %87 = arith.addf %85, %86 : vector<8x32xf32>
    %88 = math.tanh %87 : vector<8x32xf32>
    %89 = arith.mulf %84, %88 : vector<8x32xf32>
    %cst_12 = arith.constant dense<0.000000e+00> : vector<8x128xf32>
    %90 = tpu.matmul %89, %2, %cst_12 {dimension_numbers = #tpu.dot_dimension_numbers<[1], [0], [0], [1], [0, 0, 1, 1], [], []>} : vector<8x32xf32>, vector<32x128xf32>, vector<8x128xf32> -> vector<8x128xf32>
    %91 = arith.addf %21, %90 : vector<8x128xf32>
    %92 = vector.extract_strided_slice %91 {offsets = [0, 0], sizes = [8, 96], strides = [1, 1]} : vector<8x128xf32> to vector<8x96xf32>
    %93 = arith.negf %92 : vector<8x96xf32>
    %94 = math.exp %93 : vector<8x96xf32>
    %cst_13 = arith.constant 1.000000e+00 : f32
    %95 = vector.broadcast %cst_13 : f32 to vector<8x96xf32>
    %96 = arith.addf %95, %94 : vector<8x96xf32>
    %97 = arith.divf %95, %96 : vector<8x96xf32>
    %98 = vector.extract_strided_slice %91 {offsets = [0, 96], sizes = [8, 32], strides = [1, 1]} : vector<8x128xf32> to vector<8x32xf32>
    %99 = math.tanh %98 : vector<8x32xf32>
    %100 = vector.extract_strided_slice %97 {offsets = [0, 0], sizes = [8, 32], strides = [1, 1]} : vector<8x96xf32> to vector<8x32xf32>
    %101 = vector.extract_strided_slice %97 {offsets = [0, 32], sizes = [8, 32], strides = [1, 1]} : vector<8x96xf32> to vector<8x32xf32>
    %102 = vector.extract_strided_slice %97 {offsets = [0, 64], sizes = [8, 32], strides = [1, 1]} : vector<8x96xf32> to vector<8x32xf32>
    %103 = arith.mulf %101, %87 : vector<8x32xf32>
    %104 = arith.mulf %100, %99 : vector<8x32xf32>
    %105 = arith.addf %103, %104 : vector<8x32xf32>
    %106 = math.tanh %105 : vector<8x32xf32>
    %107 = arith.mulf %102, %106 : vector<8x32xf32>
    %cst_14 = arith.constant dense<0.000000e+00> : vector<8x128xf32>
    %108 = tpu.matmul %107, %2, %cst_14 {dimension_numbers = #tpu.dot_dimension_numbers<[1], [0], [0], [1], [0, 0, 1, 1], [], []>} : vector<8x32xf32>, vector<32x128xf32>, vector<8x128xf32> -> vector<8x128xf32>
    %109 = arith.addf %27, %108 : vector<8x128xf32>
    %110 = vector.extract_strided_slice %109 {offsets = [0, 0], sizes = [8, 96], strides = [1, 1]} : vector<8x128xf32> to vector<8x96xf32>
    %111 = arith.negf %110 : vector<8x96xf32>
    %112 = math.exp %111 : vector<8x96xf32>
    %cst_15 = arith.constant 1.000000e+00 : f32
    %113 = vector.broadcast %cst_15 : f32 to vector<8x96xf32>
    %114 = arith.addf %113, %112 : vector<8x96xf32>
    %115 = arith.divf %113, %114 : vector<8x96xf32>
    %116 = vector.extract_strided_slice %109 {offsets = [0, 96], sizes = [8, 32], strides = [1, 1]} : vector<8x128xf32> to vector<8x32xf32>
    %117 = math.tanh %116 : vector<8x32xf32>
    %118 = vector.extract_strided_slice %115 {offsets = [0, 0], sizes = [8, 32], strides = [1, 1]} : vector<8x96xf32> to vector<8x32xf32>
    %119 = vector.extract_strided_slice %115 {offsets = [0, 32], sizes = [8, 32], strides = [1, 1]} : vector<8x96xf32> to vector<8x32xf32>
    %120 = vector.extract_strided_slice %115 {offsets = [0, 64], sizes = [8, 32], strides = [1, 1]} : vector<8x96xf32> to vector<8x32xf32>
    %121 = arith.mulf %119, %105 : vector<8x32xf32>
    %122 = arith.mulf %118, %117 : vector<8x32xf32>
    %123 = arith.addf %121, %122 : vector<8x32xf32>
    %124 = math.tanh %123 : vector<8x32xf32>
    %125 = arith.mulf %120, %124 : vector<8x32xf32>
    %cst_16 = arith.constant dense<0.000000e+00> : vector<8x128xf32>
    %126 = tpu.matmul %125, %2, %cst_16 {dimension_numbers = #tpu.dot_dimension_numbers<[1], [0], [0], [1], [0, 0, 1, 1], [], []>} : vector<8x32xf32>, vector<32x128xf32>, vector<8x128xf32> -> vector<8x128xf32>
    %127 = arith.addf %33, %126 : vector<8x128xf32>
    %128 = vector.extract_strided_slice %127 {offsets = [0, 0], sizes = [8, 96], strides = [1, 1]} : vector<8x128xf32> to vector<8x96xf32>
    %129 = arith.negf %128 : vector<8x96xf32>
    %130 = math.exp %129 : vector<8x96xf32>
    %cst_17 = arith.constant 1.000000e+00 : f32
    %131 = vector.broadcast %cst_17 : f32 to vector<8x96xf32>
    %132 = arith.addf %131, %130 : vector<8x96xf32>
    %133 = arith.divf %131, %132 : vector<8x96xf32>
    %134 = vector.extract_strided_slice %127 {offsets = [0, 96], sizes = [8, 32], strides = [1, 1]} : vector<8x128xf32> to vector<8x32xf32>
    %135 = math.tanh %134 : vector<8x32xf32>
    %136 = vector.extract_strided_slice %133 {offsets = [0, 0], sizes = [8, 32], strides = [1, 1]} : vector<8x96xf32> to vector<8x32xf32>
    %137 = vector.extract_strided_slice %133 {offsets = [0, 32], sizes = [8, 32], strides = [1, 1]} : vector<8x96xf32> to vector<8x32xf32>
    %138 = vector.extract_strided_slice %133 {offsets = [0, 64], sizes = [8, 32], strides = [1, 1]} : vector<8x96xf32> to vector<8x32xf32>
    %139 = arith.mulf %137, %123 : vector<8x32xf32>
    %140 = arith.mulf %136, %135 : vector<8x32xf32>
    %141 = arith.addf %139, %140 : vector<8x32xf32>
    %142 = math.tanh %141 : vector<8x32xf32>
    %143 = arith.mulf %138, %142 : vector<8x32xf32>
    %cst_18 = arith.constant dense<0.000000e+00> : vector<8x128xf32>
    %144 = tpu.matmul %143, %2, %cst_18 {dimension_numbers = #tpu.dot_dimension_numbers<[1], [0], [0], [1], [0, 0, 1, 1], [], []>} : vector<8x32xf32>, vector<32x128xf32>, vector<8x128xf32> -> vector<8x128xf32>
    %145 = arith.addf %39, %144 : vector<8x128xf32>
    %146 = vector.extract_strided_slice %145 {offsets = [0, 0], sizes = [8, 96], strides = [1, 1]} : vector<8x128xf32> to vector<8x96xf32>
    %147 = arith.negf %146 : vector<8x96xf32>
    %148 = math.exp %147 : vector<8x96xf32>
    %cst_19 = arith.constant 1.000000e+00 : f32
    %149 = vector.broadcast %cst_19 : f32 to vector<8x96xf32>
    %150 = arith.addf %149, %148 : vector<8x96xf32>
    %151 = arith.divf %149, %150 : vector<8x96xf32>
    %152 = vector.extract_strided_slice %145 {offsets = [0, 96], sizes = [8, 32], strides = [1, 1]} : vector<8x128xf32> to vector<8x32xf32>
    %153 = math.tanh %152 : vector<8x32xf32>
    %154 = vector.extract_strided_slice %151 {offsets = [0, 0], sizes = [8, 32], strides = [1, 1]} : vector<8x96xf32> to vector<8x32xf32>
    %155 = vector.extract_strided_slice %151 {offsets = [0, 32], sizes = [8, 32], strides = [1, 1]} : vector<8x96xf32> to vector<8x32xf32>
    %156 = vector.extract_strided_slice %151 {offsets = [0, 64], sizes = [8, 32], strides = [1, 1]} : vector<8x96xf32> to vector<8x32xf32>
    %157 = arith.mulf %155, %141 : vector<8x32xf32>
    %158 = arith.mulf %154, %153 : vector<8x32xf32>
    %159 = arith.addf %157, %158 : vector<8x32xf32>
    %160 = math.tanh %159 : vector<8x32xf32>
    %161 = arith.mulf %156, %160 : vector<8x32xf32>
    %cst_20 = arith.constant dense<0.000000e+00> : vector<8x128xf32>
    %162 = tpu.matmul %161, %2, %cst_20 {dimension_numbers = #tpu.dot_dimension_numbers<[1], [0], [0], [1], [0, 0, 1, 1], [], []>} : vector<8x32xf32>, vector<32x128xf32>, vector<8x128xf32> -> vector<8x128xf32>
    %163 = arith.addf %45, %162 : vector<8x128xf32>
    %164 = vector.extract_strided_slice %163 {offsets = [0, 0], sizes = [8, 96], strides = [1, 1]} : vector<8x128xf32> to vector<8x96xf32>
    %165 = arith.negf %164 : vector<8x96xf32>
    %166 = math.exp %165 : vector<8x96xf32>
    %cst_21 = arith.constant 1.000000e+00 : f32
    %167 = vector.broadcast %cst_21 : f32 to vector<8x96xf32>
    %168 = arith.addf %167, %166 : vector<8x96xf32>
    %169 = arith.divf %167, %168 : vector<8x96xf32>
    %170 = vector.extract_strided_slice %163 {offsets = [0, 96], sizes = [8, 32], strides = [1, 1]} : vector<8x128xf32> to vector<8x32xf32>
    %171 = math.tanh %170 : vector<8x32xf32>
    %172 = vector.extract_strided_slice %169 {offsets = [0, 0], sizes = [8, 32], strides = [1, 1]} : vector<8x96xf32> to vector<8x32xf32>
    %173 = vector.extract_strided_slice %169 {offsets = [0, 32], sizes = [8, 32], strides = [1, 1]} : vector<8x96xf32> to vector<8x32xf32>
    %174 = vector.extract_strided_slice %169 {offsets = [0, 64], sizes = [8, 32], strides = [1, 1]} : vector<8x96xf32> to vector<8x32xf32>
    %175 = arith.mulf %173, %159 : vector<8x32xf32>
    %176 = arith.mulf %172, %171 : vector<8x32xf32>
    %177 = arith.addf %175, %176 : vector<8x32xf32>
    %178 = math.tanh %177 : vector<8x32xf32>
    %179 = arith.mulf %174, %178 : vector<8x32xf32>
    %cst_22 = arith.constant dense<0.000000e+00> : vector<8x128xf32>
    %180 = tpu.matmul %179, %2, %cst_22 {dimension_numbers = #tpu.dot_dimension_numbers<[1], [0], [0], [1], [0, 0, 1, 1], [], []>} : vector<8x32xf32>, vector<32x128xf32>, vector<8x128xf32> -> vector<8x128xf32>
    %181 = arith.addf %51, %180 : vector<8x128xf32>
    %182 = vector.extract_strided_slice %181 {offsets = [0, 0], sizes = [8, 96], strides = [1, 1]} : vector<8x128xf32> to vector<8x96xf32>
    %183 = arith.negf %182 : vector<8x96xf32>
    %184 = math.exp %183 : vector<8x96xf32>
    %cst_23 = arith.constant 1.000000e+00 : f32
    %185 = vector.broadcast %cst_23 : f32 to vector<8x96xf32>
    %186 = arith.addf %185, %184 : vector<8x96xf32>
    %187 = arith.divf %185, %186 : vector<8x96xf32>
    %188 = vector.extract_strided_slice %181 {offsets = [0, 96], sizes = [8, 32], strides = [1, 1]} : vector<8x128xf32> to vector<8x32xf32>
    %189 = math.tanh %188 : vector<8x32xf32>
    %190 = vector.extract_strided_slice %187 {offsets = [0, 0], sizes = [8, 32], strides = [1, 1]} : vector<8x96xf32> to vector<8x32xf32>
    %191 = vector.extract_strided_slice %187 {offsets = [0, 32], sizes = [8, 32], strides = [1, 1]} : vector<8x96xf32> to vector<8x32xf32>
    %192 = vector.extract_strided_slice %187 {offsets = [0, 64], sizes = [8, 32], strides = [1, 1]} : vector<8x96xf32> to vector<8x32xf32>
    %193 = arith.mulf %191, %177 : vector<8x32xf32>
    %194 = arith.mulf %190, %189 : vector<8x32xf32>
    %195 = arith.addf %193, %194 : vector<8x32xf32>
    %196 = math.tanh %195 : vector<8x32xf32>
    %197 = arith.mulf %192, %196 : vector<8x32xf32>
    %c0_24 = arith.constant 0 : index
    %c0_25 = arith.constant 0 : index
    %198 = vector.load %arg5[%c0_24, %c0_25] : memref<32x1xf32, #tpu.memory_space<vmem>>, vector<32x1xf32>
    %cst_26 = arith.constant dense<0.000000e+00> : vector<8x1xf32>
    %199 = tpu.matmul %197, %198, %cst_26 {dimension_numbers = #tpu.dot_dimension_numbers<[1], [0], [0], [1], [0, 0, 1, 1], [], []>} : vector<8x32xf32>, vector<32x1xf32>, vector<8x1xf32> -> vector<8x1xf32>
    %c0_27 = arith.constant 0 : index
    %c0_28 = arith.constant 0 : index
    %200 = vector.load %arg6[%c0_27, %c0_28] : memref<1x1xf32, #tpu.memory_space<vmem>>, vector<1x1xf32>
    %201 = vector.broadcast %200 : vector<1x1xf32> to vector<8x1xf32>
    %202 = arith.addf %199, %201 : vector<8x1xf32>
    %c0_29 = arith.constant 0 : index
    %c0_30 = arith.constant 0 : index
    %203 = vector.load %arg7[%c0_29, %c0_30] : memref<8x1xf32, #tpu.memory_space<vmem>>, vector<8x1xf32>
    tpu.vector_store %arg7[%c0_29, %c0_30], %202 {strides = array<i32>} : memref<8x1xf32, #tpu.memory_space<vmem>>, vector<8x1xf32>,
    return
  }
  func.func @transform_0(%arg0: i32) -> (i32, i32) {
    %c0_i32 = arith.constant 0 : i32
    %c0_i32_0 = arith.constant 0 : i32
    return %arg0, %c0_i32 : i32, i32
  }
  func.func @transform_1(%arg0: i32) -> (i32, i32) {
    %c0_i32 = arith.constant 0 : i32
    %c0_i32_0 = arith.constant 0 : i32
    %c0_i32_1 = arith.constant 0 : i32
    return %c0_i32, %c0_i32_0 : i32, i32
  }
  func.func @transform_2(%arg0: i32) -> (i32, i32) {
    %c0_i32 = arith.constant 0 : i32
    %c0_i32_0 = arith.constant 0 : i32
    %c0_i32_1 = arith.constant 0 : i32
    return %c0_i32, %c0_i32_0 : i32, i32
  }
  func.func @transform_3(%arg0: i32) -> (i32, i32) {
    %c0_i32 = arith.constant 0 : i32
    %c0_i32_0 = arith.constant 0 : i32
    %c0_i32_1 = arith.constant 0 : i32
    return %c0_i32, %c0_i32_0 : i32, i32
  }
  func.func @transform_4(%arg0: i32) -> (i32, i32) {
    %c0_i32 = arith.constant 0 : i32
    %c0_i32_0 = arith.constant 0 : i32
    %c0_i32_1 = arith.constant 0 : i32
    return %c0_i32, %c0_i32_0 : i32, i32
  }
  func.func @transform_5(%arg0: i32) -> (i32, i32) {
    %c0_i32 = arith.constant 0 : i32
    %c0_i32_0 = arith.constant 0 : i32
    %c0_i32_1 = arith.constant 0 : i32
    return %c0_i32, %c0_i32_0 : i32, i32
  }
  func.func @transform_6(%arg0: i32) -> (i32, i32) {
    %c0_i32 = arith.constant 0 : i32
    %c0_i32_0 = arith.constant 0 : i32
    return %arg0, %c0_i32 : i32, i32
  }
}

</mosaic_0001>

<bundles_post_ra>
// kernel: tpu_custom_call.1
= control target key start
LH: loop header
LB: loop body
LE: loop exit
PB: predicated region body
PF: predicated region fallthrough
CT: control target
= control target key end

     0   :  { %v1286_v0 = vmov 0.0|0.0   ;;  %vm1287_vm0 = vmmov 0   ;;  %v1288_v4 = vmov 0.0   ;;  %v1289_v7 = vmov 0   ;;  %s1290_s9 = smov 32   ;;  %s1500_s2 = inlined_call_operand.vmem [shape: f32[32,128], index: 2, kind: input, shape index: {}]   ;;  %s1501_s0 = inlined_call_operand.vmem [shape: f32[8,8], index: 0, kind: input, shape index: {}]   ;;  %s1502_s1 = inlined_call_operand.vmem [shape: f32[1,128], index: 1, kind: input, shape index: {}]   ;;  %s1503_s3 = inlined_call_operand.vmem [shape: f32[1,128], index: 3, kind: input, shape index: {}]   ;;  %s1504_s4 = inlined_call_operand.vmem [shape: f32[32,1], index: 4, kind: input, shape index: {}]   ;;  %s1505_s5 = inlined_call_operand.<no memory space> [shape: f32[1,1], index: 5, kind: input, shape index: {}]   ;;  %s1506_s6 = inlined_call_operand.vmem [shape: f32[8,1], index: 6, kind: output, shape index: {}]  }
   0x1   :  { %1147 = vmatprep.subr.bf16.mxu0 %v1286_v0  ;;  %v27_v1 = vld [vmem:[%s1500_s2] sm:$0xff]  ;;  %v28_v2 = vld [vmem:[%s1500_s2 + $0x8] sm:$0xff]  ;;  %v29_v3 = vld [vmem:[%s1500_s2 + $0x10] sm:$0xff]  ;;  %1056 = vmatprep.mubr.msk.f32.mxu0 %vm1287_vm0, %v1288_v4  ;;  %v1291_v29 = vmov 1   ;;  %vm93_vm1 = vcmask 261120   ;;  %v1293_v50 = vmov 2  }
   0x2   :  { %v1346_v5 = vpack.c.bf16 %v28_v2, %v27_v1  ;;  %v30_v6 = vld [vmem:[%s1500_s2 + $0x18] sm:$0xff]  ;;  %1214 = vset.pattern.permute.xlu0 %v1289_v7  ;;  %v1354_v8 = vld [vmem:[%s1501_s0] sm:$0xff]  ;;  %1153 = vmatprep.subr.bf16.mxu1 %v1286_v0  ;;  %vm978_vm2 = vcmask 7168  }
   0x3   :  { %34 = vperm.xlu0 %1214, %v1354_v8   ;;  %1067 = vmatprep.mubr.msk.f32.mxu1 %vm1287_vm0, %v1288_v4  ;;  %v1361_v9 = vpack.c.bf16 %v30_v6, %v29_v3  ;;  %v1380_v10 = vld [vmem:[%s1502_s1] ss:$0 sm:$0xff]  ;;  %s1292_s1 = smov 64  }
   0x4   :  { %1149 = vmatpush3.bf16.msra.mxu0 %v1346_v5  ;;  %1155 = vmatpush3.bf16.msra.mxu1 %v1346_v5  ;;  %v1386_v13 = vld [vmem:[%s1503_s3] ss:$0 sm:$0xff] }
   0x5   :  { %1150 = vmatprep.subr.bf16.mxu0 %v1286_v0  ;;  %1156 = vmatprep.subr.bf16.mxu1 %v1286_v0 }
   0x6   :  { %1215 = vset.pattern.permute.xlu1 %v1291_v29 }
   0x7   :  { %1216 = vset.pattern.permute.xlu0 %v1293_v50 }
   0x8   :  { %1152 = vmatpush3.bf16.msra.mxu0 %v1361_v9  ;;  %1158 = vmatpush3.bf16.msra.mxu1 %v1361_v9 }
   0x9   :  { %1159 = vmatprep.subr.bf16.mxu0 %v1286_v0  ;;  %1165 = vmatprep.subr.bf16.mxu1 %v1286_v0 }
   0xb   :  { %1057 = vmatmul.mubr.f32.vlgmr.msra.gmra.mrb[0].mxu0 %v1288_v4 }
   0xc   :  { %1161 = vmatpush3.bf16.msra.mxu0 %v1346_v5  ;;  %1078 = vmatprep.mubr.msk.f32.mxu0 %vm1287_vm0, %v1288_v4 }
   0xd   :  { %1162 = vmatprep.subr.bf16.mxu0 %v1286_v0 }
  0x10   :  { %1164 = vmatpush3.bf16.msra.mxu0 %v1361_v9 }
  0x11   :  { %1171 = vmatprep.subr.bf16.mxu0 %v1286_v0 }
  0x82   :  { %v35_v11 = vpop.permute.xlu0 %34 }
  0x83   :  { %v43_v12 = vmul.f32 %v1380_v10, %v35_v11 }
  0x85   :  { %v50_v14 = vadd.f32 %v1386_v13, %v43_v12 }
  0xde   :  { %v163_v15 = vpop.f32.mrb[0].mxu0 }
  0xdf   :  { %v167_v16 = vadd.f32 %v163_v15, %v50_v14  ;;  %v1058_v17 = vpop.f32.mrb[1].mxu0  ;;  %v1294_v14 = vmov 3  }
  0xe1   :  { %1222 = vtanh.f32 %v167_v16  ;;  %v986_v19 = vmul.f32 -1.442695, %v167_v16 }
  0xe3   :  { %1224 = vpow2.f32 %v986_v19 }
  0xeb   :  { %v1223_v18 = vpop.eup %1222 }
  0xec   :  { %177 = vrot.lane.b32.xlu0 %v1223_v18, %s1290_s9 }
  0xed   :  { %v1225_v20 = vpop.eup %1224 }
  0xee   :  { %v171_v21 = vadd.f32 1.0, %v1225_v20 }
  0xf0   :  { %1226 = vrcp.f32 %v171_v21 }
  0xfa   :  { %v1227_v22 = vpop.eup %1226 }
  0xfb   :  { %v175_v25 = vmul.f32 0.0, %v1227_v22 }
 0x15e   :  { %v178_v23 = vpop.permute.xlu0 %177 }
 0x15f   :  { %v180_v24 = vmul.f32 %v1227_v22, %v178_v23 }
 0x161   :  { %182 = vrot.lane.b32.xlu1 %v180_v24, %s1290_s9 }
 0x1d3   :  { %v183_v26 = vpop.permute.xlu1 %182 }
 0x1d4   :  { %v185_v27 = vadd.f32 %v183_v26, %v175_v25 }
 0x1d6   :  { %1228 = vtanh.f32 %v185_v27 }
 0x1e0   :  { %v1229_v28 = vpop.eup %1228 }
 0x1e1   :  { %188 = vrot.lane.b32.xlu1 %v1229_v28, %s1290_s9 }
 0x1e5   :  { %52 = vperm.xlu1 %1215, %v1354_v8  }
 0x253   :  { %v189_v30 = vpop.permute.xlu1 %188 }
 0x254   :  { %v191_v31 = vmul.f32 %v1227_v22, %v189_v30 }
 0x256   :  { %193 = vrot.lane.b32.xlu0 %v191_v31, %s1292_s1 }
 0x264   :  { %v53_v33 = vpop.permute.xlu1 %52 }
 0x265   :  { %v55_v34 = vmul.f32 %v1380_v10, %v53_v33 }
 0x267   :  { %v56_v35 = vadd.f32 %v1386_v13, %v55_v34 }
 0x2c8   :  { %v194_v32 = vpop.permute.xlu0 %193 }
 0x2c9   :  { %1068 = vmatmul.mubr.msk.f32.vlgmr.msra.gmra.mrb[0].mxu1 %vm93_vm1, %v194_v32 }
 0x2ca   :  { %1167 = vmatpush3.bf16.msra.mxu1 %v1346_v5  ;;  %1089 = vmatprep.mubr.msk.f32.mxu1 %vm1287_vm0, %v1288_v4 }
 0x2cb   :  { %1168 = vmatprep.subr.bf16.mxu1 %v1286_v0 }
 0x2ce   :  { %1170 = vmatpush3.bf16.msra.mxu1 %v1361_v9 }
 0x2cf   :  { %1177 = vmatprep.subr.bf16.mxu1 %v1286_v0 }
 0x39c   :  { %v263_v36 = vpop.f32.mrb[0].mxu1 }
 0x39d   :  { %v267_v37 = vadd.f32 %v263_v36, %v56_v35  ;;  %v1069_v38 = vpop.f32.mrb[1].mxu1  ;;  %v1295_v35 = vmov 4  }
 0x39f   :  { %1230 = vtanh.f32 %v267_v37  ;;  %v988_v40 = vmul.f32 -1.442695, %v267_v37 }
 0x3a1   :  { %1232 = vpow2.f32 %v988_v40 }
 0x3a9   :  { %v1231_v39 = vpop.eup %1230 }
 0x3aa   :  { %277 = vrot.lane.b32.xlu0 %v1231_v39, %s1290_s9 }
 0x3ab   :  { %v1233_v41 = vpop.eup %1232 }
 0x3ac   :  { %v271_v42 = vadd.f32 1.0, %v1233_v41 }
 0x3ae   :  { %1234 = vrcp.f32 %v271_v42 }
 0x3b8   :  { %v1235_v43 = vpop.eup %1234 }
 0x3b9   :  { %v275_v46 = vmul.f32 %v1235_v43, %v185_v27 }
 0x41c   :  { %v278_v44 = vpop.permute.xlu0 %277 }
 0x41d   :  { %v280_v45 = vmul.f32 %v1235_v43, %v278_v44 }
 0x41f   :  { %282 = vrot.lane.b32.xlu1 %v280_v45, %s1290_s9 }
 0x491   :  { %v283_v47 = vpop.permute.xlu1 %282 }
 0x492   :  { %v285_v48 = vadd.f32 %v283_v47, %v275_v46 }
 0x494   :  { %1236 = vtanh.f32 %v285_v48 }
 0x49e   :  { %v1237_v49 = vpop.eup %1236 }
 0x49f   :  { %288 = vrot.lane.b32.xlu0 %v1237_v49, %s1290_s9 }
 0x4a3   :  { %58 = vperm.xlu0 %1216, %v1354_v8  }
 0x4a7   :  { %1217 = vset.pattern.permute.xlu0 %v1294_v14 }
 0x511   :  { %v289_v51 = vpop.permute.xlu0 %288 }
 0x512   :  { %v291_v52 = vmul.f32 %v1235_v43, %v289_v51 }
 0x514   :  { %293 = vrot.lane.b32.xlu1 %v291_v52, %s1292_s1 }
 0x522   :  { %v59_v54 = vpop.permute.xlu0 %58 }
 0x523   :  { %v61_v55 = vmul.f32 %v1380_v10, %v59_v54 }
 0x525   :  { %v62_v56 = vadd.f32 %v1386_v13, %v61_v55 }
 0x586   :  { %v294_v53 = vpop.permute.xlu1 %293 }
 0x587   :  { %1079 = vmatmul.mubr.msk.f32.vlgmr.msra.gmra.mrb[2].mxu0 %vm93_vm1, %v294_v53 }
 0x588   :  { %1173 = vmatpush3.bf16.msra.mxu0 %v1346_v5  ;;  %1100 = vmatprep.mubr.msk.f32.mxu0 %vm1287_vm0, %v1288_v4 }
 0x589   :  { %1174 = vmatprep.subr.bf16.mxu0 %v1286_v0 }
 0x58c   :  { %1176 = vmatpush3.bf16.msra.mxu0 %v1361_v9 }
 0x58d   :  { %1183 = vmatprep.subr.bf16.mxu0 %v1286_v0 }
 0x65a   :  { %v363_v57 = vpop.f32.mrb[2].mxu0 }
 0x65b   :  { %v367_v58 = vadd.f32 %v363_v57, %v62_v56  ;;  %v1080_v59 = vpop.f32.mrb[3].mxu0  ;;  %v1296_v56 = vmov 5  }
 0x65d   :  { %1238 = vtanh.f32 %v367_v58  ;;  %v990_v61 = vmul.f32 -1.442695, %v367_v58 }
 0x65f   :  { %1240 = vpow2.f32 %v990_v61 }
 0x667   :  { %v1239_v60 = vpop.eup %1238 }
 0x668   :  { %377 = vrot.lane.b32.xlu1 %v1239_v60, %s1290_s9 }
 0x669   :  { %v1241_v62 = vpop.eup %1240 }
 0x66a   :  { %v371_v63 = vadd.f32 1.0, %v1241_v62 }
 0x66c   :  { %1242 = vrcp.f32 %v371_v63 }
 0x676   :  { %v1243_v1 = vpop.eup %1242 }
 0x677   :  { %v375_v6 = vmul.f32 %v1243_v1, %v285_v48 }
 0x6da   :  { %v378_v2 = vpop.permute.xlu1 %377 }
 0x6db   :  { %v380_v3 = vmul.f32 %v1243_v1, %v378_v2 }
 0x6dd   :  { %382 = vrot.lane.b32.xlu1 %v380_v3, %s1290_s9 }
 0x74f   :  { %v383_v7 = vpop.permute.xlu1 %382 }
 0x750   :  { %v385_v11 = vadd.f32 %v383_v7, %v375_v6 }
 0x752   :  { %1244 = vtanh.f32 %v385_v11 }
 0x75c   :  { %v1245_v12 = vpop.eup %1244 }
 0x75d   :  { %388 = vrot.lane.b32.xlu0 %v1245_v12, %s1290_s9 }
 0x761   :  { %64 = vperm.xlu0 %1217, %v1354_v8  }
 0x765   :  { %1218 = vset.pattern.permute.xlu0 %v1295_v35 }
 0x7cf   :  { %v389_v15 = vpop.permute.xlu0 %388 }
 0x7d0   :  { %v391_v16 = vmul.f32 %v1243_v1, %v389_v15 }
 0x7d2   :  { %393 = vrot.lane.b32.xlu1 %v391_v16, %s1292_s1 }
 0x7e0   :  { %v65_v18 = vpop.permute.xlu0 %64 }
 0x7e1   :  { %v67_v19 = vmul.f32 %v1380_v10, %v65_v18  ;;  %v1297_v18 = vmov 6  }
 0x7e3   :  { %v68_v20 = vadd.f32 %v1386_v13, %v67_v19 }
 0x844   :  { %v394_v17 = vpop.permute.xlu1 %393 }
 0x845   :  { %1090 = vmatmul.mubr.msk.f32.vlgmr.msra.gmra.mrb[2].mxu1 %vm93_vm1, %v394_v17 }
 0x846   :  { %1179 = vmatpush3.bf16.msra.mxu1 %v1346_v5  ;;  %1111 = vmatprep.mubr.msk.f32.mxu1 %vm1287_vm0, %v1288_v4 }
 0x847   :  { %1180 = vmatprep.subr.bf16.mxu1 %v1286_v0 }
 0x84a   :  { %1182 = vmatpush3.bf16.msra.mxu1 %v1361_v9 }
 0x84b   :  { %1189 = vmatprep.subr.bf16.mxu1 %v1286_v0 }
 0x918   :  { %v463_v21 = vpop.f32.mrb[2].mxu1 }
 0x919   :  { %v467_v22 = vadd.f32 %v463_v21, %v68_v20  ;;  %v1091_v23 = vpop.f32.mrb[3].mxu1 }
 0x91b   :  { %1246 = vtanh.f32 %v467_v22  ;;  %v992_v25 = vmul.f32 -1.442695, %v467_v22 }
 0x91d   :  { %1248 = vpow2.f32 %v992_v25 }
 0x925   :  { %v1247_v24 = vpop.eup %1246 }
 0x926   :  { %477 = vrot.lane.b32.xlu1 %v1247_v24, %s1290_s9 }
 0x927   :  { %v1249_v26 = vpop.eup %1248 }
 0x928   :  { %v471_v27 = vadd.f32 1.0, %v1249_v26 }
 0x92a   :  { %1250 = vrcp.f32 %v471_v27 }
 0x934   :  { %v1251_v28 = vpop.eup %1250 }
 0x935   :  { %v475_v31 = vmul.f32 %v1251_v28, %v385_v11 }
 0x998   :  { %v478_v29 = vpop.permute.xlu1 %477 }
 0x999   :  { %v480_v30 = vmul.f32 %v1251_v28, %v478_v29 }
 0x99b   :  { %482 = vrot.lane.b32.xlu1 %v480_v30, %s1290_s9 }
 0xa0d   :  { %v483_v32 = vpop.permute.xlu1 %482 }
 0xa0e   :  { %v485_v33 = vadd.f32 %v483_v32, %v475_v31 }
 0xa10   :  { %1252 = vtanh.f32 %v485_v33 }
 0xa1a   :  { %v1253_v34 = vpop.eup %1252 }
 0xa1b   :  { %488 = vrot.lane.b32.xlu0 %v1253_v34, %s1290_s9 }
 0xa1f   :  { %70 = vperm.xlu0 %1218, %v1354_v8  }
 0xa23   :  { %1219 = vset.pattern.permute.xlu0 %v1296_v56  ;;  %v893_v56 = vld [vmem:[%s1504_s4 + $0x8] sm:$0xff] }
 0xa8d   :  { %v489_v36 = vpop.permute.xlu0 %488 }
 0xa8e   :  { %v491_v37 = vmul.f32 %v1251_v28, %v489_v36 }
 0xa90   :  { %493 = vrot.lane.b32.xlu1 %v491_v37, %s1292_s1 }
 0xa9e   :  { %v71_v39 = vpop.permute.xlu0 %70 }
 0xa9f   :  { %v73_v40 = vmul.f32 %v1380_v10, %v71_v39 }
 0xaa1   :  { %v74_v41 = vadd.f32 %v1386_v13, %v73_v40 }
 0xb02   :  { %v494_v38 = vpop.permute.xlu1 %493 }
 0xb03   :  { %1101 = vmatmul.mubr.msk.f32.vlgmr.msra.gmra.mrb[4].mxu0 %vm93_vm1, %v494_v38  ;;  %v1298_v38 = vmov 7  }
 0xb04   :  { %1185 = vmatpush3.bf16.msra.mxu0 %v1346_v5  ;;  %1122 = vmatprep.mubr.msk.f32.mxu0 %vm1287_vm0, %v1288_v4 }
 0xb05   :  { %1186 = vmatprep.subr.bf16.mxu0 %v1286_v0 }
 0xb08   :  { %1188 = vmatpush3.bf16.msra.mxu0 %v1361_v9 }
 0xb09   :  { %1195 = vmatprep.subr.bf16.mxu0 %v1286_v0 }
 0xbd6   :  { %v563_v42 = vpop.f32.mrb[4].mxu0 }
 0xbd7   :  { %v567_v43 = vadd.f32 %v563_v42, %v74_v41  ;;  %v1102_v44 = vpop.f32.mrb[5].mxu0 }
 0xbd9   :  { %1254 = vtanh.f32 %v567_v43  ;;  %v994_v46 = vmul.f32 -1.442695, %v567_v43 }
 0xbdb   :  { %1256 = vpow2.f32 %v994_v46 }
 0xbe3   :  { %v1255_v45 = vpop.eup %1254 }
 0xbe4   :  { %577 = vrot.lane.b32.xlu1 %v1255_v45, %s1290_s9 }
 0xbe5   :  { %v1257_v47 = vpop.eup %1256 }
 0xbe6   :  { %v571_v48 = vadd.f32 1.0, %v1257_v47 }
 0xbe8   :  { %1258 = vrcp.f32 %v571_v48 }
 0xbf2   :  { %v1259_v49 = vpop.eup %1258 }
 0xbf3   :  { %v575_v52 = vmul.f32 %v1259_v49, %v485_v33 }
 0xc56   :  { %v578_v50 = vpop.permute.xlu1 %577 }
 0xc57   :  { %v580_v51 = vmul.f32 %v1259_v49, %v578_v50 }
 0xc59   :  { %582 = vrot.lane.b32.xlu1 %v580_v51, %s1290_s9 }
 0xccb   :  { %v583_v53 = vpop.permute.xlu1 %582 }
 0xccc   :  { %v585_v54 = vadd.f32 %v583_v53, %v575_v52 }
 0xcce   :  { %1260 = vtanh.f32 %v585_v54 }
 0xcd8   :  { %v1261_v55 = vpop.eup %1260 }
 0xcd9   :  { %588 = vrot.lane.b32.xlu0 %v1261_v55, %s1290_s9  ;;  %v892_v55 = vld [vmem:[%s1504_s4] sm:$0xff] }
 0xcdd   :  { %76 = vperm.xlu0 %1219, %v1354_v8  }
 0xce1   :  { %1220 = vset.pattern.permute.xlu0 %v1297_v18 }
 0xd4b   :  { %v589_v57 = vpop.permute.xlu0 %588 }
 0xd4c   :  { %v591_v58 = vmul.f32 %v1259_v49, %v589_v57  ;;  %v894_v57 = vld [vmem:[%s1504_s4 + $0x10] sm:$0xff] }
 0xd4e   :  { %593 = vrot.lane.b32.xlu1 %v591_v58, %s1292_s1  ;;  %v1196_v58 = vpack.c.bf16 %v893_v56, %v892_v55 }
 0xd5c   :  { %v77_v60 = vpop.permute.xlu0 %76 }
 0xd5d   :  { %v79_v61 = vmul.f32 %v1380_v10, %v77_v60 }
 0xd5f   :  { %v80_v62 = vadd.f32 %v1386_v13, %v79_v61 }
 0xdc0   :  { %v594_v59 = vpop.permute.xlu1 %593 }
 0xdc1   :  { %1112 = vmatmul.mubr.msk.f32.vlgmr.msra.gmra.mrb[4].mxu1 %vm93_vm1, %v594_v59  ;;  %v895_v59 = vld [vmem:[%s1504_s4 + $0x18] sm:$0xff] }
 0xdc2   :  { %1191 = vmatpush3.bf16.msra.mxu1 %v1346_v5  ;;  %1133 = vmatprep.mubr.msk.f32.mxu1 %vm1287_vm0, %v1288_v4  ;;  %v1199_v60 = vpack.c.bf16 %v895_v59, %v894_v57 }
 0xdc3   :  { %1192 = vmatprep.subr.bf16.mxu1 %v1286_v0 }
 0xdc6   :  { %1194 = vmatpush3.bf16.msra.mxu1 %v1361_v9 }
 0xe94   :  { %v663_v63 = vpop.f32.mrb[4].mxu1 }
 0xe95   :  { %v667_v1 = vadd.f32 %v663_v63, %v80_v62  ;;  %v1113_v2 = vpop.f32.mrb[5].mxu1  ;;  %v11_v62 = vstv %s1505_s5 }
 0xe96   :  { %12 = vst [vmem:[#allocation2] sm:$0x1] %v11_v62 }
 0xe97   :  { %1262 = vtanh.f32 %v667_v1  ;;  %v996_v5 = vmul.f32 -1.442695, %v667_v1 }
 0xe99   :  { %1264 = vpow2.f32 %v996_v5 }
 0xea1   :  { %v1263_v3 = vpop.eup %1262 }
 0xea2   :  { %677 = vrot.lane.b32.xlu1 %v1263_v3, %s1290_s9  ;;  %v1001_v3 = vld [vmem:[#allocation2] ss:$0 sm:$0xff] }
 0xea3   :  { %v1265_v6 = vpop.eup %1264 }
 0xea4   :  { %v671_v7 = vadd.f32 1.0, %v1265_v6 }
 0xea6   :  { %1266 = vrcp.f32 %v671_v7 }
 0xeb0   :  { %v1267_v11 = vpop.eup %1266 }
 0xeb1   :  { %v675_v14 = vmul.f32 %v1267_v11, %v585_v54 }
 0xf14   :  { %v678_v12 = vpop.permute.xlu1 %677 }
 0xf15   :  { %v680_v9 = vmul.f32 %v1267_v11, %v678_v12 }
 0xf17   :  { %682 = vrot.lane.b32.xlu1 %v680_v9, %s1290_s9 }
 0xf89   :  { %v683_v15 = vpop.permute.xlu1 %682 }
 0xf8a   :  { %v685_v16 = vadd.f32 %v683_v15, %v675_v14 }
 0xf8c   :  { %1268 = vtanh.f32 %v685_v16 }
 0xf96   :  { %v1269_v17 = vpop.eup %1268 }
 0xf97   :  { %688 = vrot.lane.b32.xlu0 %v1269_v17, %s1290_s9 }
 0xf9b   :  { %82 = vperm.xlu0 %1220, %v1354_v8  }
 0xf9f   :  { %1221 = vset.pattern.permute.xlu0 %v1298_v38 }
0x1009   :  { %v689_v19 = vpop.permute.xlu0 %688 }
0x100a   :  { %v691_v20 = vmul.f32 %v1267_v11, %v689_v19 }
0x100c   :  { %693 = vrot.lane.b32.xlu1 %v691_v20, %s1292_s1 }
0x101a   :  { %v83_v22 = vpop.permute.xlu0 %82 }
0x101b   :  { %v85_v23 = vmul.f32 %v1380_v10, %v83_v22 }
0x101d   :  { %v86_v24 = vadd.f32 %v1386_v13, %v85_v23 }
0x107e   :  { %v694_v21 = vpop.permute.xlu1 %693 }
0x107f   :  { %1123 = vmatmul.mubr.msk.f32.vlgmr.msra.gmra.mrb[6].mxu0 %vm93_vm1, %v694_v21 }
0x1080   :  { %1144 = vmatprep.mubr.msk.f32.mxu0 %vm1287_vm0, %v1288_v4  ;;  %1197 = vmatpush3.bf16.msra.mxu0 %v1196_v58 }
0x1081   :  { %1198 = vmatprep.subr.bf16.mxu0 %v1286_v0 }
0x1084   :  { %1200 = vmatpush3.bf16.msra.mxu0 %v1199_v60 }
0x1152   :  { %v763_v25 = vpop.f32.mrb[6].mxu0 }
0x1153   :  { %v767_v26 = vadd.f32 %v763_v25, %v86_v24  ;;  %v1124_v27 = vpop.f32.mrb[7].mxu0 }
0x1155   :  { %1270 = vtanh.f32 %v767_v26  ;;  %v998_v29 = vmul.f32 -1.442695, %v767_v26 }
0x1157   :  { %1272 = vpow2.f32 %v998_v29 }
0x115f   :  { %v1271_v28 = vpop.eup %1270 }
0x1160   :  { %777 = vrot.lane.b32.xlu1 %v1271_v28, %s1290_s9 }
0x1161   :  { %v1273_v30 = vpop.eup %1272 }
0x1162   :  { %v771_v31 = vadd.f32 1.0, %v1273_v30 }
0x1164   :  { %1274 = vrcp.f32 %v771_v31 }
0x116e   :  { %v1275_v32 = vpop.eup %1274 }
0x116f   :  { %v775_v34 = vmul.f32 %v1275_v32, %v685_v16 }
0x11d2   :  { %v778_v33 = vpop.permute.xlu1 %777 }
0x11d3   :  { %v780_v4 = vmul.f32 %v1275_v32, %v778_v33 }
0x11d5   :  { %782 = vrot.lane.b32.xlu1 %v780_v4, %s1290_s9 }
0x1247   :  { %v783_v35 = vpop.permute.xlu1 %782 }
0x1248   :  { %v785_v36 = vadd.f32 %v783_v35, %v775_v34 }
0x124a   :  { %1276 = vtanh.f32 %v785_v36 }
0x1254   :  { %v1277_v37 = vpop.eup %1276 }
0x1255   :  { %788 = vrot.lane.b32.xlu0 %v1277_v37, %s1290_s9 }
0x1259   :  { %88 = vperm.xlu0 %1221, %v1354_v8  }
0x12c7   :  { %v789_v39 = vpop.permute.xlu0 %788 }
0x12c8   :  { %v791_v40 = vmul.f32 %v1275_v32, %v789_v39 }
0x12ca   :  { %793 = vrot.lane.b32.xlu1 %v791_v40, %s1292_s1 }
0x12d8   :  { %v89_v42 = vpop.permute.xlu0 %88 }
0x12d9   :  { %v91_v43 = vmul.f32 %v1380_v10, %v89_v42 }
0x12db   :  { %v92_v44 = vadd.f32 %v1386_v13, %v91_v43 }
0x133c   :  { %v794_v41 = vpop.permute.xlu1 %793 }
0x133d   :  { %1134 = vmatmul.mubr.msk.f32.vlgmr.msra.gmra.mrb[6].mxu1 %vm93_vm1, %v794_v41 }
0x1410   :  { %v863_v45 = vpop.f32.mrb[6].mxu1 }
0x1411   :  { %v867_v46 = vadd.f32 %v863_v45, %v92_v44  ;;  %v1135_v47 = vpop.f32.mrb[7].mxu1 }
0x1413   :  { %1278 = vtanh.f32 %v867_v46  ;;  %v1000_v8 = vmul.f32 -1.442695, %v867_v46 }
0x1415   :  { %1280 = vpow2.f32 %v1000_v8 }
0x141d   :  { %v1279_v48 = vpop.eup %1278 }
0x141e   :  { %877 = vrot.lane.b32.xlu1 %v1279_v48, %s1290_s9 }
0x141f   :  { %v1281_v49 = vpop.eup %1280 }
0x1420   :  { %v871_v50 = vadd.f32 1.0, %v1281_v49 }
0x1422   :  { %1282 = vrcp.f32 %v871_v50 }
0x142c   :  { %v1283_v51 = vpop.eup %1282 }
0x142d   :  { %v875_v10 = vmul.f32 %v1283_v51, %v785_v36 }
0x1490   :  { %v878_v52 = vpop.permute.xlu1 %877 }
0x1491   :  { %v880_v53 = vmul.f32 %v1283_v51, %v878_v52 }
0x1493   :  { %882 = vrot.lane.b32.xlu1 %v880_v53, %s1290_s9 }
0x1505   :  { %v883_v54 = vpop.permute.xlu1 %882 }
0x1506   :  { %v885_v13 = vadd.f32 %v883_v54, %v875_v10 }
0x1508   :  { %1284 = vtanh.f32 %v885_v13 }
0x1512   :  { %v1285_v61 = vpop.eup %1284 }
0x1513   :  { %888 = vrot.lane.b32.xlu0 %v1285_v61, %s1290_s9 }
0x1585   :  { %v889_v63 = vpop.permute.xlu0 %888 }
0x1586   :  { %v891_v1 = vmul.f32 %v1283_v51, %v889_v63 }
0x1588   :  { %904 = vrot.lane.b32.xlu1 %v891_v1, %s1292_s1 }
0x15fa   :  { %v905_v2 = vpop.permute.xlu1 %904 }
0x15fb   :  { %1145 = vmatmul.mubr.msk.f32.vlgmr.msra.gmra.mrb[8].mxu0 %vm93_vm1, %v905_v2 }
0x16ce   :  { %v974_v5 = vpop.f32.mrb[8].mxu0 }
0x16cf   :  { %v975_v0 = vadd.f32 %v1001_v3, %v974_v5  ;;  %v1146_v6 = vpop.f32.mrb[9].mxu0 }
0x16d1   :  { %979 = vst.msk [vmem:[%s1506_s6] sm:$0xff] %vm978_vm2, %v975_v0 }

</bundles_post_ra>
